<compile_context>
chip_gen: v5e
topology: v5e:2x2
jax: 0.10.0
libtpu: 0.0.40
codegen_flags: <defaults>
</compile_context>

<pallas_src>
import functools

import jax
import jax.numpy as jnp
from jax.experimental import pallas as pl
from jax.experimental.pallas import tpu as pltpu

LANE = 128           # lane width (last dim of every block)
MAX_ROW_TILE = 2048  # rows per grid step (5 MiB of HBM traffic per step)
ROW_ALIGN = 16       # row tiles are multiples of this (== SUB_ROWS)
SUB_ROWS = 16        # in-kernel strip-mine: 2 vregs per temporary, ~36 live vregs peak


def _round_up(a, b):
    return ((a + b - 1) // b) * b


def _choose_row_tile(rows_needed):
    """Pick a large row tile, but keep >=2 grid steps when there is enough work
    (v7x has 2 TensorCores sharded over the parallel grid axis) and avoid
    over-padding tiny inputs."""
    if rows_needed <= ROW_ALIGN:
        return ROW_ALIGN
    half = _round_up((rows_needed + 1) // 2, ROW_ALIGN)
    return min(MAX_ROW_TILE, half)


def _qmap_kernel(w_ref, x_ref, y_ref, q0_ref, q1_ref, q2_ref, *, row_tile):
    """w_ref: (3,5) SMEM coefficients; x_ref/y_ref: (row_tile, LANE) VMEM planes;
    q0/q1/q2_ref: (row_tile, LANE) VMEM output planes (one per surface component)."""
    # Hoist the 15 coefficient scalar reads (and derived scalars) out of the loop.
    w = [[w_ref[i, j] for j in range(5)] for i in range(3)]
    two_w3 = [2.0 * w[i][3] for i in range(3)]
    two_w4 = [2.0 * w[i][4] for i in range(3)]

    def body(it, carry):
        r0 = pl.multiple_of(it * SUB_ROWS, SUB_ROWS)
        x = x_ref[pl.ds(r0, SUB_ROWS), :]
        y = y_ref[pl.ds(r0, SUB_ROWS), :]
        xx = x * x
        yy = y * y
        xy = x * y

        s, dfx, dfy = [], [], []
        for i in range(3):
            w0, w1, w2, w3, w4 = w[i]
            s.append(w0 * x + w1 * y + w2 * xy + w3 * xx + w4 * yy)
            # Analytic partials of the quadratic surface. The reference's central
            # finite difference is exact for quadratics (for any h), so this is
            # the same math with only f32 rounding differences.
            dfx.append(w0 + w2 * y + two_w3[i] * x)
            dfy.append(w1 + w2 * x + two_w4[i] * y)

        # cross(dfx, dfy) over the 3 components, then (its norm)^(1/2).
        cx = dfx[1] * dfy[2] - dfx[2] * dfy[1]
        cy = dfx[2] * dfy[0] - dfx[0] * dfy[2]
        cz = dfx[0] * dfy[1] - dfx[1] * dfy[0]
        ss = cx * cx + cy * cy + cz * cz
        scale = jnp.sqrt(jnp.sqrt(ss))  # sqrt(volume_factor); two EUP sqrts

        q0_ref[pl.ds(r0, SUB_ROWS), :] = scale * s[0]
        q1_ref[pl.ds(r0, SUB_ROWS), :] = scale * s[1]
        q2_ref[pl.ds(r0, SUB_ROWS), :] = scale * s[2]
        return carry

    jax.lax.fori_loop(0, row_tile // SUB_ROWS, body, 0)


def qmap_pallas(X, W, h=0.001):
    """X: (..., 2) points, W: (3, 5) surface coefficients -> (..., 3).

    `h` is accepted for API parity with the PyTorch module; central differences of a
    quadratic are exact, so the analytic partials used in-kernel are h-independent."""
    del h
    assert X.shape[-1] == 2
    lead_shape = X.shape[:-1]
    n = 1
    for d in lead_shape:
        n *= d

    x = X[..., 0].astype(jnp.float32).reshape(n)
    y = X[..., 1].astype(jnp.float32).reshape(n)
    W = W.astype(jnp.float32)

    rows_needed = pl.cdiv(n, LANE)
    row_tile = _choose_row_tile(rows_needed)
    rows = _round_up(rows_needed, row_tile)
    padded = rows * LANE
    x = jnp.pad(x, (0, padded - n)).reshape(rows, LANE)
    y = jnp.pad(y, (0, padded - n)).reshape(rows, LANE)

    plane = jax.ShapeDtypeStruct((rows, LANE), jnp.float32)
    spec = pl.BlockSpec((row_tile, LANE), lambda i: (i, 0))
    kernel = functools.partial(_qmap_kernel, row_tile=row_tile)

    q0, q1, q2 = pl.pallas_call(
        kernel,
        out_shape=(plane, plane, plane),
        grid_spec=pltpu.PrefetchScalarGridSpec(
            num_scalar_prefetch=0,
            grid=(rows // row_tile,),
            in_specs=[
                pl.BlockSpec(memory_space=pltpu.SMEM),  # W coefficients (scalars)
                spec,                                   # x plane
                spec,                                   # y plane
            ],
            out_specs=(spec, spec, spec),               # 3 component planes
        ),
        compiler_params=pltpu.CompilerParams(dimension_semantics=("parallel",)),
    )(W, x, y)

    # (rows, LANE) planes -> (..., 3). Layout plumbing kept outside the kernel and
    # inside the same jit so XLA fuses the split/pad/stack with the kernel's neighbours.
    q = jnp.stack(
        [q0.reshape(padded)[:n], q1.reshape(padded)[:n], q2.reshape(padded)[:n]],
        axis=-1,
    )
    return q.reshape(lead_shape + (3,))


def qmap_reference(X, W, h=0.001):
    """Plain-JAX reference mirroring the PyTorch Qmap/Surface forward (finite diffs)."""
    def comp(i, P):
        xx, yy = P[..., 0], P[..., 1]
        return (W[i, 0] * xx + W[i, 1] * yy + W[i, 2] * xx * yy
                + W[i, 3] * xx * xx + W[i, 4] * yy * yy)

    def surf(P):
        return jnp.stack([comp(i, P) for i in range(3)], axis=-1)

    Hx = jnp.zeros_like(X).at[..., 0].set(h)
    Hy = jnp.zeros_like(X).at[..., 1].set(h)
    dfx = 0.5 * (surf(X + Hx) - surf(X - Hx)) / h
    dfy = 0.5 * (surf(X + Hy) - surf(X - Hy)) / h
    vol = jnp.linalg.norm(jnp.cross(dfx, dfy, axis=-1), axis=-1, keepdims=True)
    return jnp.sqrt(vol) * surf(X)


if __name__ == "__main__":
    key = jax.random.PRNGKey(0)
    kx, kw = jax.random.split(key)

    # Small batch of 2D parameter-domain points, shape (..., 2).
    X = jax.random.uniform(kx, (2, 16, 16, 2), dtype=jnp.float32, minval=-1.0, maxval=1.0)
    # Deterministic synthetic surface coefficients (3 components x 5 basis terms).
    W = jax.random.normal(kw, (3, 5), dtype=jnp.float32)

    qmap = jax.jit(qmap_pallas, static_argnames=("h",))

    q = jax.block_until_ready(qmap(X, W, h=0.001))
    q_ref = qmap_reference(X, W, h=0.001)
    assert q.shape == X.shape[:-1] + (3,)
    # Analytic partials vs. f32 finite differences agree to ~1e-4; tolerance 2e-3.
    assert jnp.allclose(q, q_ref, rtol=2e-3, atol=2e-3), float(jnp.max(jnp.abs(q - q_ref)))

    # Larger shape: exercises a multi-step grid and the in-kernel sub-tile loop.
    X2 = jax.random.uniform(kx, (4, 64, 64, 2), dtype=jnp.float32, minval=-1.0, maxval=1.0)
    q2 = jax.block_until_ready(qmap(X2, W, h=0.001))
    q2_ref = qmap_reference(X2, W, h=0.001)
    assert jnp.allclose(q2, q2_ref, rtol=2e-3, atol=2e-3), float(jnp.max(jnp.abs(q2 - q2_ref)))

    # Ragged size (n not a multiple of 128): exercises the padding / unpad path.
    X3 = jax.random.uniform(kx, (3, 37, 2), dtype=jnp.float32, minval=-1.0, maxval=1.0)
    q3 = jax.block_until_ready(qmap(X3, W, h=0.001))
    q3_ref = qmap_reference(X3, W, h=0.001)
    assert jnp.allclose(q3, q3_ref, rtol=2e-3, atol=2e-3), float(jnp.max(jnp.abs(q3 - q3_ref)))

    print("KERNEL_OK")
</pallas_src>

<mosaic_0001>
module attributes {stable_mosaic.version = 11 : i64} {
  func.func @_qmap_kernel(%arg0: i32, %arg1: memref<3x5xf32, #tpu.memory_space<smem>>, %arg2: memref<16x128xf32, #tpu.memory_space<vmem>>, %arg3: memref<16x128xf32, #tpu.memory_space<vmem>>, %arg4: memref<16x128xf32, #tpu.memory_space<vmem>>, %arg5: memref<16x128xf32, #tpu.memory_space<vmem>>, %arg6: memref<16x128xf32, #tpu.memory_space<vmem>>) attributes {dimension_semantics = [#tpu.dimension_semantics<parallel>], iteration_bounds = array<i64: 1>, scalar_prefetch = 0 : i64, scratch_operands = 0 : i64, tpu.core_type = #tpu.core_type<tc>, window_params = [{transform_indices = @transform_0, window_bounds = array<i64: 3, 5>}, {transform_indices = @transform_1, window_bounds = array<i64: 16, 128>}, {transform_indices = @transform_2, window_bounds = array<i64: 16, 128>}, {transform_indices = @transform_3, window_bounds = array<i64: 16, 128>}, {transform_indices = @transform_4, window_bounds = array<i64: 16, 128>}, {transform_indices = @transform_5, window_bounds = array<i64: 16, 128>}]} {
    %c0 = arith.constant 0 : index
    %c0_0 = arith.constant 0 : index
    %0 = memref.load %arg1[%c0, %c0_0] : memref<3x5xf32, #tpu.memory_space<smem>>
    %c0_1 = arith.constant 0 : index
    %c1 = arith.constant 1 : index
    %1 = memref.load %arg1[%c0_1, %c1] : memref<3x5xf32, #tpu.memory_space<smem>>
    %c0_2 = arith.constant 0 : index
    %c2 = arith.constant 2 : index
    %2 = memref.load %arg1[%c0_2, %c2] : memref<3x5xf32, #tpu.memory_space<smem>>
    %c0_3 = arith.constant 0 : index
    %c3 = arith.constant 3 : index
    %3 = memref.load %arg1[%c0_3, %c3] : memref<3x5xf32, #tpu.memory_space<smem>>
    %c0_4 = arith.constant 0 : index
    %c4 = arith.constant 4 : index
    %4 = memref.load %arg1[%c0_4, %c4] : memref<3x5xf32, #tpu.memory_space<smem>>
    %c1_5 = arith.constant 1 : index
    %c0_6 = arith.constant 0 : index
    %5 = memref.load %arg1[%c1_5, %c0_6] : memref<3x5xf32, #tpu.memory_space<smem>>
    %c1_7 = arith.constant 1 : index
    %c1_8 = arith.constant 1 : index
    %6 = memref.load %arg1[%c1_7, %c1_8] : memref<3x5xf32, #tpu.memory_space<smem>>
    %c1_9 = arith.constant 1 : index
    %c2_10 = arith.constant 2 : index
    %7 = memref.load %arg1[%c1_9, %c2_10] : memref<3x5xf32, #tpu.memory_space<smem>>
    %c1_11 = arith.constant 1 : index
    %c3_12 = arith.constant 3 : index
    %8 = memref.load %arg1[%c1_11, %c3_12] : memref<3x5xf32, #tpu.memory_space<smem>>
    %c1_13 = arith.constant 1 : index
    %c4_14 = arith.constant 4 : index
    %9 = memref.load %arg1[%c1_13, %c4_14] : memref<3x5xf32, #tpu.memory_space<smem>>
    %c2_15 = arith.constant 2 : index
    %c0_16 = arith.constant 0 : index
    %10 = memref.load %arg1[%c2_15, %c0_16] : memref<3x5xf32, #tpu.memory_space<smem>>
    %c2_17 = arith.constant 2 : index
    %c1_18 = arith.constant 1 : index
    %11 = memref.load %arg1[%c2_17, %c1_18] : memref<3x5xf32, #tpu.memory_space<smem>>
    %c2_19 = arith.constant 2 : index
    %c2_20 = arith.constant 2 : index
    %12 = memref.load %arg1[%c2_19, %c2_20] : memref<3x5xf32, #tpu.memory_space<smem>>
    %c2_21 = arith.constant 2 : index
    %c3_22 = arith.constant 3 : index
    %13 = memref.load %arg1[%c2_21, %c3_22] : memref<3x5xf32, #tpu.memory_space<smem>>
    %c2_23 = arith.constant 2 : index
    %c4_24 = arith.constant 4 : index
    %14 = memref.load %arg1[%c2_23, %c4_24] : memref<3x5xf32, #tpu.memory_space<smem>>
    %cst = arith.constant 2.000000e+00 : f32
    %15 = arith.mulf %cst, %3 : f32
    %cst_25 = arith.constant 2.000000e+00 : f32
    %16 = arith.mulf %cst_25, %8 : f32
    %cst_26 = arith.constant 2.000000e+00 : f32
    %17 = arith.mulf %cst_26, %13 : f32
    %cst_27 = arith.constant 2.000000e+00 : f32
    %18 = arith.mulf %cst_27, %4 : f32
    %cst_28 = arith.constant 2.000000e+00 : f32
    %19 = arith.mulf %cst_28, %9 : f32
    %cst_29 = arith.constant 2.000000e+00 : f32
    %20 = arith.mulf %cst_29, %14 : f32
    %c0_i32 = arith.constant 0 : i32
    %c16_i32 = arith.constant 16 : i32
    %21 = arith.muli %c0_i32, %c16_i32 : i32
    %22 = tpu.assume_multiple %21, 16 : i32
    %23 = arith.index_cast %22 : i32 to index
    %c0_30 = arith.constant 0 : index
    %24 = vector.load %arg2[%23, %c0_30] : memref<16x128xf32, #tpu.memory_space<vmem>>, vector<16x128xf32>
    %25 = arith.index_cast %22 : i32 to index
    %c0_31 = arith.constant 0 : index
    %26 = vector.load %arg3[%25, %c0_31] : memref<16x128xf32, #tpu.memory_space<vmem>>, vector<16x128xf32>
    %27 = arith.mulf %24, %24 : vector<16x128xf32>
    %28 = arith.mulf %26, %26 : vector<16x128xf32>
    %29 = arith.mulf %24, %26 : vector<16x128xf32>
    %30 = vector.broadcast %0 : f32 to vector<16x128xf32>
    %31 = arith.mulf %30, %24 : vector<16x128xf32>
    %32 = vector.broadcast %1 : f32 to vector<16x128xf32>
    %33 = arith.mulf %32, %26 : vector<16x128xf32>
    %34 = arith.addf %31, %33 : vector<16x128xf32>
    %35 = vector.broadcast %2 : f32 to vector<16x128xf32>
    %36 = arith.mulf %35, %29 : vector<16x128xf32>
    %37 = arith.addf %34, %36 : vector<16x128xf32>
    %38 = vector.broadcast %3 : f32 to vector<16x128xf32>
    %39 = arith.mulf %38, %27 : vector<16x128xf32>
    %40 = arith.addf %37, %39 : vector<16x128xf32>
    %41 = vector.broadcast %4 : f32 to vector<16x128xf32>
    %42 = arith.mulf %41, %28 : vector<16x128xf32>
    %43 = arith.addf %40, %42 : vector<16x128xf32>
    %44 = vector.broadcast %2 : f32 to vector<16x128xf32>
    %45 = arith.mulf %44, %26 : vector<16x128xf32>
    %46 = vector.broadcast %0 : f32 to vector<16x128xf32>
    %47 = arith.addf %46, %45 : vector<16x128xf32>
    %48 = vector.broadcast %15 : f32 to vector<16x128xf32>
    %49 = arith.mulf %48, %24 : vector<16x128xf32>
    %50 = arith.addf %47, %49 : vector<16x128xf32>
    %51 = vector.broadcast %2 : f32 to vector<16x128xf32>
    %52 = arith.mulf %51, %24 : vector<16x128xf32>
    %53 = vector.broadcast %1 : f32 to vector<16x128xf32>
    %54 = arith.addf %53, %52 : vector<16x128xf32>
    %55 = vector.broadcast %18 : f32 to vector<16x128xf32>
    %56 = arith.mulf %55, %26 : vector<16x128xf32>
    %57 = arith.addf %54, %56 : vector<16x128xf32>
    %58 = vector.broadcast %5 : f32 to vector<16x128xf32>
    %59 = arith.mulf %58, %24 : vector<16x128xf32>
    %60 = vector.broadcast %6 : f32 to vector<16x128xf32>
    %61 = arith.mulf %60, %26 : vector<16x128xf32>
    %62 = arith.addf %59, %61 : vector<16x128xf32>
    %63 = vector.broadcast %7 : f32 to vector<16x128xf32>
    %64 = arith.mulf %63, %29 : vector<16x128xf32>
    %65 = arith.addf %62, %64 : vector<16x128xf32>
    %66 = vector.broadcast %8 : f32 to vector<16x128xf32>
    %67 = arith.mulf %66, %27 : vector<16x128xf32>
    %68 = arith.addf %65, %67 : vector<16x128xf32>
    %69 = vector.broadcast %9 : f32 to vector<16x128xf32>
    %70 = arith.mulf %69, %28 : vector<16x128xf32>
    %71 = arith.addf %68, %70 : vector<16x128xf32>
    %72 = vector.broadcast %7 : f32 to vector<16x128xf32>
    %73 = arith.mulf %72, %26 : vector<16x128xf32>
    %74 = vector.broadcast %5 : f32 to vector<16x128xf32>
    %75 = arith.addf %74, %73 : vector<16x128xf32>
    %76 = vector.broadcast %16 : f32 to vector<16x128xf32>
    %77 = arith.mulf %76, %24 : vector<16x128xf32>
    %78 = arith.addf %75, %77 : vector<16x128xf32>
    %79 = vector.broadcast %7 : f32 to vector<16x128xf32>
    %80 = arith.mulf %79, %24 : vector<16x128xf32>
    %81 = vector.broadcast %6 : f32 to vector<16x128xf32>
    %82 = arith.addf %81, %80 : vector<16x128xf32>
    %83 = vector.broadcast %19 : f32 to vector<16x128xf32>
    %84 = arith.mulf %83, %26 : vector<16x128xf32>
    %85 = arith.addf %82, %84 : vector<16x128xf32>
    %86 = vector.broadcast %10 : f32 to vector<16x128xf32>
    %87 = arith.mulf %86, %24 : vector<16x128xf32>
    %88 = vector.broadcast %11 : f32 to vector<16x128xf32>
    %89 = arith.mulf %88, %26 : vector<16x128xf32>
    %90 = arith.addf %87, %89 : vector<16x128xf32>
    %91 = vector.broadcast %12 : f32 to vector<16x128xf32>
    %92 = arith.mulf %91, %29 : vector<16x128xf32>
    %93 = arith.addf %90, %92 : vector<16x128xf32>
    %94 = vector.broadcast %13 : f32 to vector<16x128xf32>
    %95 = arith.mulf %94, %27 : vector<16x128xf32>
    %96 = arith.addf %93, %95 : vector<16x128xf32>
    %97 = vector.broadcast %14 : f32 to vector<16x128xf32>
    %98 = arith.mulf %97, %28 : vector<16x128xf32>
    %99 = arith.addf %96, %98 : vector<16x128xf32>
    %100 = vector.broadcast %12 : f32 to vector<16x128xf32>
    %101 = arith.mulf %100, %26 : vector<16x128xf32>
    %102 = vector.broadcast %10 : f32 to vector<16x128xf32>
    %103 = arith.addf %102, %101 : vector<16x128xf32>
    %104 = vector.broadcast %17 : f32 to vector<16x128xf32>
    %105 = arith.mulf %104, %24 : vector<16x128xf32>
    %106 = arith.addf %103, %105 : vector<16x128xf32>
    %107 = vector.broadcast %12 : f32 to vector<16x128xf32>
    %108 = arith.mulf %107, %24 : vector<16x128xf32>
    %109 = vector.broadcast %11 : f32 to vector<16x128xf32>
    %110 = arith.addf %109, %108 : vector<16x128xf32>
    %111 = vector.broadcast %20 : f32 to vector<16x128xf32>
    %112 = arith.mulf %111, %26 : vector<16x128xf32>
    %113 = arith.addf %110, %112 : vector<16x128xf32>
    %114 = arith.mulf %78, %113 : vector<16x128xf32>
    %115 = arith.mulf %106, %85 : vector<16x128xf32>
    %116 = arith.subf %114, %115 : vector<16x128xf32>
    %117 = arith.mulf %106, %57 : vector<16x128xf32>
    %118 = arith.mulf %50, %113 : vector<16x128xf32>
    %119 = arith.subf %117, %118 : vector<16x128xf32>
    %120 = arith.mulf %50, %85 : vector<16x128xf32>
    %121 = arith.mulf %78, %57 : vector<16x128xf32>
    %122 = arith.subf %120, %121 : vector<16x128xf32>
    %123 = arith.mulf %116, %116 : vector<16x128xf32>
    %124 = arith.mulf %119, %119 : vector<16x128xf32>
    %125 = arith.addf %123, %124 : vector<16x128xf32>
    %126 = arith.mulf %122, %122 : vector<16x128xf32>
    %127 = arith.addf %125, %126 : vector<16x128xf32>
    %128 = math.sqrt %127 : vector<16x128xf32>
    %129 = math.sqrt %128 : vector<16x128xf32>
    %130 = arith.mulf %129, %43 : vector<16x128xf32>
    %131 = arith.index_cast %22 : i32 to index
    %c0_32 = arith.constant 0 : index
    %132 = vector.load %arg4[%131, %c0_32] : memref<16x128xf32, #tpu.memory_space<vmem>>, vector<16x128xf32>
    tpu.vector_store %arg4[%131, %c0_32], %130 {strides = array<i32>} : memref<16x128xf32, #tpu.memory_space<vmem>>, vector<16x128xf32>,
    %133 = arith.mulf %129, %71 : vector<16x128xf32>
    %134 = arith.index_cast %22 : i32 to index
    %c0_33 = arith.constant 0 : index
    %135 = vector.load %arg5[%134, %c0_33] : memref<16x128xf32, #tpu.memory_space<vmem>>, vector<16x128xf32>
    tpu.vector_store %arg5[%134, %c0_33], %133 {strides = array<i32>} : memref<16x128xf32, #tpu.memory_space<vmem>>, vector<16x128xf32>,
    %136 = arith.mulf %129, %99 : vector<16x128xf32>
    %137 = arith.index_cast %22 : i32 to index
    %c0_34 = arith.constant 0 : index
    %138 = vector.load %arg6[%137, %c0_34] : memref<16x128xf32, #tpu.memory_space<vmem>>, vector<16x128xf32>
    tpu.vector_store %arg6[%137, %c0_34], %136 {strides = array<i32>} : memref<16x128xf32, #tpu.memory_space<vmem>>, vector<16x128xf32>,
    %c1_i32 = arith.constant 1 : i32
    return
  }
  func.func @transform_0(%arg0: i32) -> (i32, i32) {
    %c0_i32 = arith.constant 0 : i32
    %c0_i32_0 = arith.constant 0 : i32
    %c0_i32_1 = arith.constant 0 : i32
    return %c0_i32, %c0_i32_0 : i32, i32
  }
  func.func @transform_1(%arg0: i32) -> (i32, i32) {
    %c0_i32 = arith.constant 0 : i32
    %c0_i32_0 = arith.constant 0 : i32
    return %arg0, %c0_i32 : i32, i32
  }
  func.func @transform_2(%arg0: i32) -> (i32, i32) {
    %c0_i32 = arith.constant 0 : i32
    %c0_i32_0 = arith.constant 0 : i32
    return %arg0, %c0_i32 : i32, i32
  }
  func.func @transform_3(%arg0: i32) -> (i32, i32) {
    %c0_i32 = arith.constant 0 : i32
    %c0_i32_0 = arith.constant 0 : i32
    return %arg0, %c0_i32 : i32, i32
  }
  func.func @transform_4(%arg0: i32) -> (i32, i32) {
    %c0_i32 = arith.constant 0 : i32
    %c0_i32_0 = arith.constant 0 : i32
    return %arg0, %c0_i32 : i32, i32
  }
  func.func @transform_5(%arg0: i32) -> (i32, i32) {
    %c0_i32 = arith.constant 0 : i32
    %c0_i32_0 = arith.constant 0 : i32
    return %arg0, %c0_i32 : i32, i32
  }
}

</mosaic_0001>

<bundles_post_ra>
// kernel: squeeze.3
= control target key start
LH: loop header
LB: loop body
LE: loop exit
PB: predicated region body
PF: predicated region fallthrough
CT: control target
= control target key end

     0   :  { %s67_s8 = smov 112   ;;  %s68_s11 = smov 80   ;;  %vm3_vm0 = vcmask 130048   ;;  %vm9_vm1 = vcmask 1048448   ;;  %vm15_vm2 = vcmask 917248   ;;  %vm21_vm3 = vcmask 786048   ;;  %s111_s0 = inlined_call_operand.vmem [shape: f32[2,16,16], index: 0, kind: input, shape index: {}]   ;;  %s112_s1 = inlined_call_operand.vmem [shape: f32[512], index: 1, kind: output, shape index: {}]  }
   0x1   :  { %v53_v0 = vld [vmem:[%s111_s0 + $0x7] ss:$8 sm:$0xf]   ;;  %v55_v1 = vld [vmem:[%s111_s0 + $0x5] ss:$8 sm:$0xf]  }
   0x2   :  { %7 = vrot.lane.b32.xlu0 %v53_v0, %s67_s8  ;;  %19 = vrot.lane.b32.xlu1 %v55_v1, %s68_s11  ;;  %v57_v2 = vld [vmem:[%s111_s0 + $0x3] ss:$8 sm:$0xf]   ;;  %s69_s14 = smov 48   ;;  %s70_s19 = smov 96   ;;  %vm27_vm4 = vcmask 654848  }
   0x3   :  { %31 = vrot.lane.b32.xlu2 %v57_v2, %s69_s14  ;;  %v54_v3 = vld [vmem:[%s111_s0 + $0x6] ss:$8 sm:$0xf]   ;;  %v56_v4 = vld [vmem:[%s111_s0 + $0x4] ss:$8 sm:$0xf]  }
   0x4   :  { %s71_s20 = smov 64   ;;  %v58_v5 = vld [vmem:[%s111_s0 + $0x2] ss:$8 sm:$0xf]   ;;  %s72_s23 = smov 32   ;;  %vm33_vm5 = vcmask 523648  }
   0x5   :  { %v59_v6 = vld [vmem:[%s111_s0 + $0x1] ss:$8 sm:$0xf]   ;;  %s73_s26 = smov 16   ;;  %vm39_vm6 = vcmask 392448   ;;  %vm45_vm7 = vcmask 261248  }
   0x6   :  { %v2_v7 = vld [vmem:[%s111_s0] ss:$8 sm:$0xf]  }
   0x7   :  { %4 = vst.msk [vmem:[#allocation0] sm:$0xf] %vm3_vm0, %v2_v7  }
   0xa   :  { %13 = vrot.lane.b32.xlu0 %v54_v3, %s70_s19  ;;  %25 = vrot.lane.b32.xlu1 %v56_v4, %s71_s20 }
   0xb   :  { %37 = vrot.lane.b32.xlu2 %v58_v5, %s72_s23 }
  0x12   :  { %43 = vrot.lane.b32.xlu0 %v59_v6, %s73_s26 }
  0x5d   :  { %v32_v8 = vpop.permute.xlu2 %31  }
  0x65   :  { %v38_v9 = vpop.permute.xlu2 %37  }
  0x74   :  { %v8_v10 = vpop.permute.xlu0 %7   ;;  %v20_v11 = vpop.permute.xlu1 %19  }
  0x75   :  { %10 = vst.msk [vmem:[#allocation0] sm:$0xf] %vm9_vm1, %v8_v10  }
  0x7c   :  { %v14_v12 = vpop.permute.xlu0 %13   ;;  %v26_v13 = vpop.permute.xlu1 %25  }
  0x7d   :  { %16 = vst.msk [vmem:[#allocation0] sm:$0xf] %vm15_vm2, %v14_v12  }
  0x7e   :  { %22 = vst.msk [vmem:[#allocation0] sm:$0xf] %vm21_vm3, %v20_v11  }
  0x7f   :  { %28 = vst.msk [vmem:[#allocation0] sm:$0xf] %vm27_vm4, %v26_v13  }
  0x80   :  { %34 = vst.msk [vmem:[#allocation0] sm:$0xf] %vm33_vm5, %v32_v8  }
  0x81   :  { %40 = vst.msk [vmem:[#allocation0] sm:$0xf] %vm39_vm6, %v38_v9  }
  0x84   :  { %v44_v14 = vpop.permute.xlu0 %43  }
  0x85   :  { %46 = vst.msk [vmem:[#allocation0] sm:$0xf] %vm45_vm7, %v44_v14  }
  0x8c   :  { %v49_v15 = vld [vmem:[#allocation0] sm:$0xf] }
  0x8d   :  { %52 = vst [vmem:[%s112_s1] sm:$0xf] %v49_v15 }

// kernel: qmap_pallas.1
= control target key start
LH: loop header
LB: loop body
LE: loop exit
PB: predicated region body
PF: predicated region fallthrough
CT: control target
= control target key end

     0   :  { %11 = vsyncpa [#allocation3], 0  ;;  %s322_s21 = smov [#allocation2]   ;;  %s572_s0 = inlined_call_operand.vmem [shape: f32[3,5], index: 0, kind: input, shape index: {}]   ;;  %s573_s1 = inlined_call_operand.vmem [shape: f32[16,128], index: 1, kind: input, shape index: {}]   ;;  %s574_s2 = inlined_call_operand.vmem [shape: f32[16,128], index: 2, kind: input, shape index: {}]   ;;  %s575_s3 = inlined_call_operand.vmem [shape: f32[16,128], index: 3, kind: output, shape index: {0}]   ;;  %s576_s4 = inlined_call_operand.vmem [shape: f32[16,128], index: 4, kind: output, shape index: {1}]   ;;  %s577_s5 = inlined_call_operand.vmem [shape: f32[16,128], index: 5, kind: output, shape index: {2}]  }
   0x1   :  { %s17_s20 = sshll.u32 %s572_s0, 4  ;;  %s18_s20 = int_to_ptr.vmem [resolvable:$true] %s17_s20 }
   0x2   :  { %20 = dma.vmem_to_smem %s18_s20, 64, %s322_s21, [#allocation3]  }
   0x3   :  { %320 = dma.done.wait [#allocation3], 64  }
   0x4   :  { %321 = vsyncadd [#allocation3], 4294967232 }
   0x5   :  { %29 = sfence }
   0x6   :  { %s30_s22 = sld [smem:[#allocation2]]  ;;  %v367_v0 = vld [vmem:[%s574_s2] sm:$0xff]  ;;  %v372_v1 = vld [vmem:[%s574_s2 + $0x8] sm:$0xff] }
   0x7   :  { %s285_s23 = sld [smem:[#allocation2 + $0x1]]  ;;  %v379_v2 = vld [vmem:[%s573_s1] sm:$0xff]  ;;  %v393_v5 = vld [vmem:[%s573_s1 + $0x8] sm:$0xff] }
   0x8   :  { %s286_s24 = sld [smem:[#allocation2 + $0x2]] }
   0x9   :  { %s356_s25 = sld [smem:[#allocation2 + $0x3]] }
   0xa   :  { %s358_s26 = sld [smem:[#allocation2 + $0x4]] }
   0xb   :  { %s360_s27 = sld [smem:[#allocation2 + $0x80]] }
   0xc   :  { %s362_s28 = sld [smem:[#allocation2 + $0x81]]  ;;  %v383_v3 = vstv %s30_s22 }
   0xd   :  { %s374_s7 = sld [smem:[#allocation2 + $0x82]]  ;;  %v402_v8 = vstv %s285_s23 }
   0xe   :  { %s381_s10 = sld [smem:[#allocation2 + $0x83]]  ;;  %v385_v4 = vstv %s286_s24 }
   0xf   :  { %s387_s11 = sld [smem:[#allocation2 + $0x84]]  ;;  %s45_s12 = smul.f32 2.0, %s356_s25  ;;  %v84_v6 = vmul.f32 %v385_v4, %v367_v0  ;;  %v85_v7 = vmul.f32 %v385_v4, %v372_v1  ;;  %v93_v9 = vmul.f32 %v385_v4, %v379_v2  ;;  %v94_v15 = vmul.f32 %v385_v4, %v393_v5 }
  0x10   :  { %s399_s2 = sld [smem:[#allocation2 + $0x100]]  ;;  %s48_s15 = smul.f32 2.0, %s358_s26 }
  0x11   :  { %s406_s16 = sld [smem:[#allocation2 + $0x101]]  ;;  %v86_v10 = vadd.f32 %v84_v6, %v383_v3  ;;  %v88_v11 = vstv %s45_s12  ;;  %v87_v12 = vadd.f32 %v85_v7, %v383_v3  ;;  %v95_v16 = vadd.f32 %v93_v9, %v402_v8 }
  0x12   :  { %s409_s1 = sld [smem:[#allocation2 + $0x102]]  ;;  %v89_v13 = vmul.f32 %v88_v11, %v379_v2  ;;  %v90_v14 = vmul.f32 %v88_v11, %v393_v5  ;;  %v97_v17 = vstv %s48_s15  ;;  %v96_v18 = vadd.f32 %v94_v15, %v402_v8 }
  0x13   :  { %s416_s17 = sld [smem:[#allocation2 + $0x103]]  ;;  %v424_v19 = vstv %s360_s27  ;;  %v427_v20 = vstv %s362_s28  ;;  %v98_v22 = vmul.f32 %v97_v17, %v367_v0  ;;  %v99_v23 = vmul.f32 %v97_v17, %v372_v1 }
  0x14   :  { %s419_s18 = sld [smem:[#allocation2 + $0x104]]  ;;  %s46_s19 = smul.f32 2.0, %s381_s10  ;;  %v91_v21 = vadd.f32 %v89_v13, %v86_v10  ;;  %v433_v24 = vstv %s374_s7  ;;  %v92_v25 = vadd.f32 %v90_v14, %v87_v12 }
  0x15   :  { %s49_s20 = smul.f32 2.0, %s387_s11  ;;  %v125_v26 = vmul.f32 %v433_v24, %v367_v0  ;;  %v126_v27 = vmul.f32 %v433_v24, %v372_v1  ;;  %v100_v29 = vadd.f32 %v98_v22, %v95_v16  ;;  %v101_v30 = vadd.f32 %v99_v23, %v96_v18 }
  0x16   :  { %v129_v28 = vstv %s46_s19  ;;  %v134_v35 = vmul.f32 %v433_v24, %v379_v2  ;;  %v135_v36 = vmul.f32 %v433_v24, %v393_v5  ;;  %v449_v38 = vstv %s399_s2 }
  0x17   :  { %v130_v31 = vmul.f32 %v129_v28, %v379_v2  ;;  %v131_v32 = vmul.f32 %v129_v28, %v393_v5  ;;  %v127_v33 = vadd.f32 %v125_v26, %v424_v19  ;;  %v128_v34 = vadd.f32 %v126_v27, %v424_v19 }
  0x18   :  { %v138_v37 = vstv %s49_s20  ;;  %v452_v39 = vstv %s406_s16  ;;  %v455_v40 = vstv %s409_s1  ;;  %v136_v43 = vadd.f32 %v134_v35, %v427_v20 }
  0x19   :  { %s47_s21 = smul.f32 2.0, %s416_s17  ;;  %v132_v41 = vadd.f32 %v130_v31, %v127_v33  ;;  %v133_v42 = vadd.f32 %v131_v32, %v128_v34  ;;  %v137_v44 = vadd.f32 %v135_v36, %v427_v20  ;;  %v139_v45 = vmul.f32 %v138_v37, %v367_v0 }
  0x1a   :  { %s50_s22 = smul.f32 2.0, %s419_s18  ;;  %v140_v46 = vmul.f32 %v138_v37, %v372_v1  ;;  %v166_v47 = vmul.f32 %v455_v40, %v367_v0  ;;  %v167_v48 = vmul.f32 %v455_v40, %v372_v1  ;;  %v175_v50 = vmul.f32 %v455_v40, %v379_v2 }
  0x1b   :  { %v170_v49 = vstv %s47_s21  ;;  %v176_v51 = vmul.f32 %v455_v40, %v393_v5  ;;  %v141_v53 = vadd.f32 %v139_v45, %v136_v43  ;;  %v198_v10 = vmul.f32 %v132_v41, %v100_v29 }
  0x1c   :  { %v179_v52 = vstv %s50_s22  ;;  %v142_v54 = vadd.f32 %v140_v46, %v137_v44  ;;  %v168_v55 = vadd.f32 %v166_v47, %v449_v38  ;;  %v169_v56 = vadd.f32 %v167_v48, %v449_v38 }
  0x1d   :  { %v171_v57 = vmul.f32 %v170_v49, %v379_v2  ;;  %v172_v58 = vmul.f32 %v170_v49, %v393_v5  ;;  %v177_v59 = vadd.f32 %v175_v50, %v452_v39  ;;  %v178_v60 = vadd.f32 %v176_v51, %v452_v39 }
  0x1e   :  { %v180_v61 = vmul.f32 %v179_v52, %v367_v0  ;;  %v181_v62 = vmul.f32 %v179_v52, %v372_v1  ;;  %v196_v63 = vmul.f32 %v141_v53, %v91_v21  ;;  %v197_v6 = vmul.f32 %v142_v54, %v92_v25 }
  0x1f   :  { %v173_v7 = vadd.f32 %v171_v57, %v168_v55  ;;  %v174_v9 = vadd.f32 %v172_v58, %v169_v56  ;;  %v199_v11 = vmul.f32 %v133_v42, %v101_v30  ;;  %v59_v50 = vmul.f32 %v367_v0, %v379_v2 }
  0x20   :  { %v182_v12 = vadd.f32 %v180_v61, %v177_v59  ;;  %v183_v13 = vadd.f32 %v181_v62, %v178_v60  ;;  %v200_v27 = vsub.f32 %v196_v63, %v198_v10  ;;  %v486_v57 = vmul.f32 %v379_v2, %v379_v2 }
  0x21   :  { %v186_v14 = vmul.f32 %v173_v7, %v141_v53  ;;  %v187_v15 = vmul.f32 %v174_v9, %v142_v54  ;;  %v190_v16 = vmul.f32 %v173_v7, %v100_v29  ;;  %v191_v17 = vmul.f32 %v174_v9, %v101_v30 }
  0x22   :  { %v184_v18 = vmul.f32 %v182_v12, %v132_v41  ;;  %v185_v22 = vmul.f32 %v183_v13, %v133_v42  ;;  %v192_v23 = vmul.f32 %v182_v12, %v91_v21  ;;  %v193_v26 = vmul.f32 %v183_v13, %v92_v25 }
  0x23   :  { %v201_v28 = vsub.f32 %v197_v6, %v199_v11  ;;  %v208_v35 = vmul.f32 %v200_v27, %v200_v27  ;;  %v62_v53 = vmul.f32 %v383_v3, %v379_v2  ;;  %v65_v54 = vmul.f32 %v402_v8, %v367_v0 }
  0x24   :  { %v188_v31 = vsub.f32 %v184_v18, %v186_v14  ;;  %v189_v32 = vsub.f32 %v185_v22, %v187_v15  ;;  %v194_v33 = vsub.f32 %v190_v16, %v192_v23  ;;  %v195_v34 = vsub.f32 %v191_v17, %v193_v26 }
  0x25   :  { %v209_v36 = vmul.f32 %v201_v28, %v201_v28  ;;  %v70_v58 = vmul.f32 %v385_v4, %v59_v50  ;;  %v74_v60 = vstv %s356_s25  ;;  %v67_v63 = vadd.f32 %v65_v54, %v62_v53 }
  0x26   :  { %v202_v37 = vmul.f32 %v188_v31, %v188_v31  ;;  %v203_v43 = vmul.f32 %v189_v32, %v189_v32  ;;  %v204_v44 = vmul.f32 %v194_v33, %v194_v33  ;;  %v205_v45 = vmul.f32 %v195_v34, %v195_v34 }
  0x27   :  { %v492_v11 = vmul.f32 %v367_v0, %v367_v0  ;;  %v75_v12 = vmul.f32 %v74_v60, %v486_v57  ;;  %v72_v15 = vadd.f32 %v70_v58, %v67_v63  ;;  %v79_v16 = vstv %s358_s26 }
  0x28   :  { %v206_v46 = vadd.f32 %v204_v44, %v202_v37  ;;  %v207_v47 = vadd.f32 %v205_v45, %v203_v43  ;;  %v63_v17 = vmul.f32 %v383_v3, %v393_v5  ;;  %v66_v18 = vmul.f32 %v402_v8, %v372_v1 }
  0x29   :  { %v103_v23 = vmul.f32 %v424_v19, %v379_v2  ;;  %v106_v26 = vmul.f32 %v427_v20, %v367_v0  ;;  %v60_v27 = vmul.f32 %v372_v1, %v393_v5  ;;  %v104_v3 = vmul.f32 %v424_v19, %v393_v5 }
  0x2a   :  { %v210_v29 = vadd.f32 %v208_v35, %v206_v46  ;;  %v211_v30 = vadd.f32 %v209_v36, %v207_v47  ;;  %v107_v8 = vmul.f32 %v427_v20, %v372_v1  ;;  %v144_v28 = vmul.f32 %v449_v38, %v379_v2 }
  0x2b   :  { %v147_v31 = vmul.f32 %v452_v39, %v367_v0  ;;  %v80_v32 = vmul.f32 %v79_v16, %v492_v11  ;;  %v56_v33 = vmul.f32 %v393_v5, %v393_v5  ;;  %v145_v34 = vmul.f32 %v449_v38, %v393_v5 }
  0x2c   :  { %300 = vrsqrt.f32 %v210_v29  ;;  %vm219_vm0 = vcmp.eq.f32.partialorder %v210_v29, inf  ;;  %v222_v61 = vand.u32 2147483648, %v210_v29  ;;  %vm221_vm1 = vcmp.eq.f32.partialorder %v210_v29, 0.0 }
  0x2d   :  { %302 = vrsqrt.f32 %v211_v30  ;;  %vm231_vm2 = vcmp.eq.f32.partialorder %v211_v30, inf  ;;  %v234_v9 = vand.u32 2147483648, %v211_v30  ;;  %vm233_vm3 = vcmp.eq.f32.partialorder %v211_v30, 0.0 }
  0x2e   :  { %v148_v19 = vmul.f32 %v452_v39, %v372_v1  ;;  %v77_v35 = vadd.f32 %v75_v12, %v72_v15  ;;  %v68_v20 = vadd.f32 %v66_v18, %v63_v17  ;;  %v108_v36 = vadd.f32 %v106_v26, %v103_v23 }
  0x2f   :  { %v111_v2 = vmul.f32 %v433_v24, %v59_v50  ;;  %v71_v0 = vmul.f32 %v385_v4, %v60_v27  ;;  %v115_v43 = vstv %s381_s10  ;;  %v109_v44 = vadd.f32 %v107_v8, %v104_v3 }
  0x30   :  { %v112_v45 = vmul.f32 %v433_v24, %v60_v27  ;;  %v58_v5 = vmul.f32 %v372_v1, %v372_v1  ;;  %v149_v38 = vadd.f32 %v147_v31, %v144_v28  ;;  %v152_v39 = vmul.f32 %v455_v40, %v59_v50 }
  0x31   :  { %v153_v4 = vmul.f32 %v455_v40, %v60_v27  ;;  %v116_v24 = vmul.f32 %v115_v43, %v486_v57  ;;  %v117_v1 = vmul.f32 %v115_v43, %v56_v33 }
  0x32   :  { %v301_v21 = vpop.eup %300  ;;  %v154_v50 = vadd.f32 %v152_v39, %v149_v38 }
  0x33   :  { %v303_v25 = vpop.eup %302  ;;  %v213_v41 = vmul.f32 %v301_v21, %v210_v29 }
  0x34   :  { %v225_v42 = vmul.f32 %v303_v25, %v211_v30 }
  0x35   :  { %v214_v48 = vmul.f32 %v301_v21, %v213_v41 }
  0x36   :  { %v226_v49 = vmul.f32 %v303_v25, %v225_v42  ;;  %v113_v42 = vadd.f32 %v111_v2, %v108_v36 }
  0x37   :  { %v215_v51 = vmul.f32 0.5, %v214_v48  ;;  %v73_v48 = vadd.f32 %v71_v0, %v68_v20 }
  0x38   :  { %v227_v52 = vmul.f32 0.5, %v226_v49  ;;  %v120_v49 = vstv %s387_s11 }
  0x39   :  { %v216_v55 = vsub.f32 1.5, %v215_v51  ;;  %v114_v51 = vadd.f32 %v112_v45, %v109_v44 }
  0x3a   :  { %v228_v56 = vsub.f32 1.5, %v227_v52 }
  0x3b   :  { %v217_v59 = vmul.f32 %v301_v21, %v216_v55  ;;  %v150_v21 = vadd.f32 %v148_v19, %v145_v34  ;;  %v82_v55 = vadd.f32 %v80_v32, %v77_v35 }
  0x3c   :  { %v229_v62 = vmul.f32 %v303_v25, %v228_v56  ;;  %v161_v56 = vstv %s419_s18 }
  0x3d   :  { %v218_v6 = vmul.f32 %v217_v59, %v210_v29  ;;  %v155_v58 = vadd.f32 %v153_v4, %v150_v21  ;;  %v162_v15 = vmul.f32 %v161_v56, %v492_v11  ;;  %v163_v18 = vmul.f32 %v161_v56, %v58_v5 }
  0x3e   :  { %v230_v7 = vmul.f32 %v229_v62, %v211_v30  ;;  %v121_v62 = vmul.f32 %v120_v49, %v492_v11 }
  0x3f   :  { %v220_v10 = vsel %vm219_vm0, %v210_v29, %v218_v6  ;;  %v76_v29 = vmul.f32 %v74_v60, %v56_v33  ;;  %v81_v6 = vmul.f32 %v79_v16, %v58_v5 }
  0x40   :  { %v495_v13 = vsel %vm221_vm1, %v222_v61, %v220_v10  ;;  %v232_v14 = vsel %vm231_vm2, %v211_v30, %v230_v7  ;;  %v156_v30 = vstv %s416_s17  ;;  %v118_v61 = vadd.f32 %v116_v24, %v113_v42 }
  0x41   :  { %304 = vrsqrt.f32 %v495_v13  ;;  %v503_v22 = vsel %vm233_vm3, %v234_v9, %v232_v14  ;;  %v157_v54 = vmul.f32 %v156_v30, %v486_v57  ;;  %v158_v59 = vmul.f32 %v156_v30, %v56_v33 }
  0x42   :  { %306 = vrsqrt.f32 %v503_v22  ;;  %v78_v63 = vadd.f32 %v76_v29, %v73_v48  ;;  %v119_v7 = vadd.f32 %v117_v1, %v114_v51  ;;  %v122_v9 = vmul.f32 %v120_v49, %v58_v5 }
  0x43   :  { %v159_v14 = vadd.f32 %v157_v54, %v154_v50  ;;  %vm243_vm4 = vcmp.eq.f32.partialorder %v495_v13, inf  ;;  %v246_v57 = vand.u32 2147483648, %v495_v13  ;;  %v160_v17 = vadd.f32 %v158_v59, %v155_v58 }
  0x44   :  { %vm245_vm5 = vcmp.eq.f32.partialorder %v495_v13, 0.0  ;;  %v123_v27 = vadd.f32 %v121_v62, %v118_v61  ;;  %v83_v16 = vadd.f32 %v81_v6, %v78_v63  ;;  %vm255_vm6 = vcmp.eq.f32.partialorder %v503_v22, inf }
  0x45   :  { %v258_v3 = vand.u32 2147483648, %v503_v22  ;;  %v124_v8 = vadd.f32 %v122_v9, %v119_v7  ;;  %vm257_vm7 = vcmp.eq.f32.partialorder %v503_v22, 0.0  ;;  %v164_v31 = vadd.f32 %v162_v15, %v159_v14 }
  0x46   :  { %v165_v33 = vadd.f32 %v163_v18, %v160_v17 }
  0x47   :  { %v305_v37 = vpop.eup %304 }
  0x48   :  { %v237_v46 = vmul.f32 %v305_v37, %v495_v13  ;;  %v307_v47 = vpop.eup %306 }
  0x49   :  { %v249_v41 = vmul.f32 %v307_v47, %v503_v22 }
  0x4a   :  { %v238_v25 = vmul.f32 %v305_v37, %v237_v46 }
  0x4b   :  { %v250_v53 = vmul.f32 %v307_v47, %v249_v41 }
  0x4c   :  { %v239_v52 = vmul.f32 0.5, %v238_v25 }
  0x4d   :  { %v251_v60 = vmul.f32 0.5, %v250_v53 }
  0x4e   :  { %v240_v40 = vsub.f32 1.5, %v239_v52 }
  0x4f   :  { %v252_v12 = vsub.f32 1.5, %v251_v60 }
  0x50   :  { %v241_v10 = vmul.f32 %v305_v37, %v240_v40 }
  0x51   :  { %v253_v26 = vmul.f32 %v307_v47, %v252_v12 }
  0x52   :  { %v242_v23 = vmul.f32 %v241_v10, %v495_v13 }
  0x53   :  { %v254_v28 = vmul.f32 %v253_v26, %v503_v22 }
  0x54   :  { %v244_v11 = vsel %vm243_vm4, %v495_v13, %v242_v23 }
  0x55   :  { %v247_v32 = vsel %vm245_vm5, %v246_v57, %v244_v11  ;;  %v256_v19 = vsel %vm255_vm6, %v503_v22, %v254_v28 }
  0x56   :  { %v260_v34 = vmul.f32 %v247_v32, %v82_v55  ;;  %v264_v35 = vmul.f32 %v247_v32, %v123_v27  ;;  %v259_v20 = vsel %vm257_vm7, %v258_v3, %v256_v19  ;;  %v268_v37 = vmul.f32 %v247_v32, %v164_v31 }
  0x57   :  { %v261_v36 = vmul.f32 %v259_v20, %v83_v16  ;;  %v265_v2 = vmul.f32 %v259_v20, %v124_v8  ;;  %v269_v13 = vmul.f32 %v259_v20, %v165_v33 }
  0x58   :  { %262 = vst [vmem:[%s575_s3] sm:$0xff] %v260_v34 }
  0x59   :  { %266 = vst [vmem:[%s576_s4] sm:$0xff] %v264_v35 }
  0x5a   :  { %263 = vst [vmem:[%s575_s3 + $0x8] sm:$0xff] %v261_v36 }
  0x5b   :  { %267 = vst [vmem:[%s576_s4 + $0x8] sm:$0xff] %v265_v2 }
  0x5c   :  { %270 = vst [vmem:[%s577_s5] sm:$0xff] %v268_v37 }
  0x5d   :  { %271 = vst [vmem:[%s577_s5 + $0x8] sm:$0xff] %v269_v13 }
  0x5e   :  { %284 = vsyncpa [#allocation3], 1 }

</bundles_post_ra>
